<compile_context>
chip_gen: v6e
topology: v6e:2x2x1
jax: 0.10.0
libtpu: 0.0.40
codegen_flags: <defaults>
</compile_context>

<pallas_src>
from math import sqrt

import jax
import jax.numpy as jnp
from jax.experimental import pallas as pl
from jax.experimental.pallas import tpu as pltpu

_LANE = 128
_SUBLANE = 8


def _round_up(n, m):
    return ((n + m - 1) // m) * m


def _mlp_kernel(x_ref,
                w0_ref, b0_ref,
                w1_ref, b1_ref,
                w2_ref, b2_ref,
                w3_ref, b3_ref,
                o_ref):
    # One batch tile per grid step; weights/biases are VMEM-resident (constant
    # index_map) while activation tiles stream (auto double-buffered).
    h = x_ref[...]                                                   # (TM, in) f32

    h = jnp.dot(h.astype(jnp.bfloat16), w0_ref[...],
                preferred_element_type=jnp.float32) + b0_ref[...]
    h = jnp.maximum(h, 0.0)                                          # ReLU (f32, VPU)

    h = jnp.dot(h.astype(jnp.bfloat16), w1_ref[...],
                preferred_element_type=jnp.float32) + b1_ref[...]
    h = jnp.maximum(h, 0.0)                                          # ReLU

    h = jnp.dot(h.astype(jnp.bfloat16), w2_ref[...],
                preferred_element_type=jnp.float32) + b2_ref[...]
    h = jnp.tanh(h)                                                  # Tanh (f32, EUP)

    y = jnp.dot(h.astype(jnp.bfloat16), w3_ref[...],
                preferred_element_type=jnp.float32) + b3_ref[...]
    o_ref[...] = y.astype(o_ref.dtype)                               # narrow (TM, g) store


def prepare_params(params):
    """One-time preparation, hoisted out of the per-call jitted forward.

    - Weights cast to bf16 (halves weight DMA, native MXU dtype).
    - Hidden widths zero-padded to lane multiples of 128.
    - First layer's input width and last layer's output width stay natural, so
      the streamed x / y arrays are never padded in the feature dimension.
    """
    n = len(params)
    flat = []
    for li, (w, b) in enumerate(params):
        fin, fout = w.shape
        fin_p = fin if li == 0 else _round_up(fin, _LANE)
        fout_p = fout if li == n - 1 else _round_up(fout, _LANE)
        w_p = jnp.pad(jnp.asarray(w, jnp.bfloat16),
                      ((0, fin_p - fin), (0, fout_p - fout)))
        b_p = jnp.pad(jnp.asarray(b, jnp.float32),
                      ((0, 0), (0, fout_p - fout)))
        flat.extend([w_p, b_p])
    return tuple(flat)


def _batch_tiling(batch):
    """Pick (tile_rows, padded_batch).

    Large tiles for HBM roofline, >= 2 grid steps whenever the batch allows it
    (so v7x's two TensorCores both get work under dimension_semantics=parallel),
    and tail padding bounded to <= ~12.5% of the batch.
    """
    if batch <= 16:
        tm = _round_up(max(batch, 1), _SUBLANE)
        return tm, tm
    half = _round_up(pl.cdiv(batch, 2), _SUBLANE)
    for tm in (1024, 512, 256, 128, 64, 32, 16, 8):
        if tm > half:
            continue                              # would collapse to a 1-step grid
        pad = _round_up(batch, tm) - batch
        if pad * 8 <= batch:                      # tail waste <= ~12.5%
            return tm, _round_up(batch, tm)
    return _SUBLANE, _round_up(batch, _SUBLANE)


@jax.jit
def model_dynamics_forward(x, flat_params):
    """x: (batch, in_dim) f32.  flat_params: output of prepare_params()."""
    batch, in_dim = x.shape
    n_layers = len(flat_params) // 2
    g_dim = flat_params[-1].shape[1]

    tm, pad_batch = _batch_tiling(batch)
    grid = (pad_batch // tm,)

    x_p = x.astype(jnp.float32)
    if pad_batch != batch:
        x_p = jnp.pad(x_p, ((0, pad_batch - batch), (0, 0)))

    # x / out stream over the batch axis at natural feature widths; weights and
    # biases use constant index_maps so they are DMA'd once and stay resident.
    in_specs = [pl.BlockSpec((tm, in_dim), lambda i: (i, 0))]
    for li in range(n_layers):
        w = flat_params[2 * li]
        b = flat_params[2 * li + 1]
        in_specs.append(pl.BlockSpec(w.shape, lambda i: (0, 0)))
        in_specs.append(pl.BlockSpec(b.shape, lambda i: (0, 0)))
    out_spec = pl.BlockSpec((tm, g_dim), lambda i: (i, 0))

    # Advisory cost estimate so XLA can schedule this small kernel sensibly.
    flops = 0
    for li in range(n_layers):
        w = flat_params[2 * li]
        flops += 2 * pad_batch * w.shape[0] * w.shape[1]
    transcendentals = pad_batch * flat_params[2 * (n_layers - 1)].shape[0]  # tanh width
    bytes_accessed = (x_p.size * x_p.dtype.itemsize
                      + sum(a.size * a.dtype.itemsize for a in flat_params)
                      + pad_batch * g_dim * 4)

    out = pl.pallas_call(
        _mlp_kernel,
        out_shape=jax.ShapeDtypeStruct((pad_batch, g_dim), jnp.float32),
        grid=grid,
        in_specs=in_specs,
        out_specs=out_spec,
        compiler_params=pltpu.CompilerParams(
            dimension_semantics=("parallel",),      # shards tiles across v7x's 2 TCs
            vmem_limit_bytes=32 * 1024 * 1024,      # safe under v7x's 64 MiB physical
        ),
        cost_estimate=pl.CostEstimate(
            flops=int(flops),
            transcendentals=int(transcendentals),
            bytes_accessed=int(bytes_accessed),
        ),
    )(x_p, *flat_params)

    return out[:batch]


def init_params(key, s_dim, g_dim, a_dim):
    """Param init matching the PyTorch module's layer shapes.

    Weights: xavier_uniform (as in the module). Biases: PyTorch Linear default
    uniform(-1/sqrt(fan_in), 1/sqrt(fan_in)).
    """
    num_units = [
        s_dim + g_dim + a_dim,
        (s_dim + 2 * g_dim + a_dim) * 3,
        (s_dim + 2 * g_dim + a_dim) * 6,
        (s_dim + 2 * g_dim + a_dim) * 3,
        g_dim,
    ]
    params = []
    for i in range(1, len(num_units)):
        fan_in, fan_out = num_units[i - 1], num_units[i]
        key, kw, kb = jax.random.split(key, 3)
        limit = sqrt(6.0 / (fan_in + fan_out))  # xavier_uniform
        w = jax.random.uniform(kw, (fan_in, fan_out), jnp.float32, -limit, limit)
        b_limit = 1.0 / sqrt(fan_in)
        b = jax.random.uniform(kb, (1, fan_out), jnp.float32, -b_limit, b_limit)
        params.append((w, b))
    return params


def reference_forward(x, params):
    """Plain-JAX reference using the same bf16-weight / f32-accumulate recipe."""
    h = x.astype(jnp.float32)
    n = len(params)
    for i, (w, b) in enumerate(params):
        h = jnp.dot(h.astype(jnp.bfloat16), w.astype(jnp.bfloat16),
                    preferred_element_type=jnp.float32) + b
        if i < n - 2:
            h = jnp.maximum(h, 0.0)
        elif i == n - 2:
            h = jnp.tanh(h)
    return h


if __name__ == "__main__":
    # Small shapes consistent with the module: in_dim = 32, hidden = 120/240/120, out = g_dim = 8.
    s_dim, g_dim, a_dim = 16, 8, 8

    key = jax.random.PRNGKey(0)
    key, kx1, kx2 = jax.random.split(key, 3)
    params = init_params(key, s_dim, g_dim, a_dim)
    flat_params = prepare_params(params)          # one-time pad + bf16 cast (hoisted)

    # Single-tile path (tiny batch).
    batch = 8
    x = jax.random.normal(kx1, (batch, s_dim + g_dim + a_dim), jnp.float32)
    out = jax.block_until_ready(model_dynamics_forward(x, flat_params))
    ref = reference_forward(x, params)
    assert out.shape == (batch, g_dim), out.shape
    assert jnp.allclose(out, ref, atol=2e-3, rtol=2e-3), "mismatch vs reference (batch=8)"

    # Multi-step grid path (>= 2 tiles, exercises streaming + tail handling).
    batch2 = 48
    x2 = jax.random.normal(kx2, (batch2, s_dim + g_dim + a_dim), jnp.float32)
    out2 = jax.block_until_ready(model_dynamics_forward(x2, flat_params))
    ref2 = reference_forward(x2, params)
    assert out2.shape == (batch2, g_dim), out2.shape
    assert jnp.allclose(out2, ref2, atol=2e-3, rtol=2e-3), "mismatch vs reference (batch=48)"

    print("KERNEL_OK")
</pallas_src>

<mosaic_0001>
module attributes {stable_mosaic.version = 11 : i64} {
  func.func @_mlp_kernel(%arg0: i32, %arg1: memref<8x32xf32, #tpu.memory_space<vmem>>, %arg2: memref<32x128xbf16, #tpu.memory_space<vmem>>, %arg3: memref<1x128xf32, #tpu.memory_space<vmem>>, %arg4: memref<128x256xbf16, #tpu.memory_space<vmem>>, %arg5: memref<1x256xf32, #tpu.memory_space<vmem>>, %arg6: memref<256x128xbf16, #tpu.memory_space<vmem>>, %arg7: memref<1x128xf32, #tpu.memory_space<vmem>>, %arg8: memref<128x8xbf16, #tpu.memory_space<vmem>>, %arg9: memref<1x8xf32, #tpu.memory_space<vmem>>, %arg10: memref<8x8xf32, #tpu.memory_space<vmem>>) attributes {dimension_semantics = [#tpu.dimension_semantics<parallel>], iteration_bounds = array<i64: 1>, scalar_prefetch = 0 : i64, scratch_operands = 0 : i64, tpu.core_type = #tpu.core_type<tc>, window_params = [{transform_indices = @transform_0, window_bounds = array<i64: 8, 32>}, {pipeline_mode = #tpu.pipeline_mode<synchronous>, transform_indices = @transform_1, window_bounds = array<i64: 32, 128>}, {pipeline_mode = #tpu.pipeline_mode<synchronous>, transform_indices = @transform_2, window_bounds = array<i64: 1, 128>}, {pipeline_mode = #tpu.pipeline_mode<synchronous>, transform_indices = @transform_3, window_bounds = array<i64: 128, 256>}, {pipeline_mode = #tpu.pipeline_mode<synchronous>, transform_indices = @transform_4, window_bounds = array<i64: 1, 256>}, {pipeline_mode = #tpu.pipeline_mode<synchronous>, transform_indices = @transform_5, window_bounds = array<i64: 256, 128>}, {pipeline_mode = #tpu.pipeline_mode<synchronous>, transform_indices = @transform_6, window_bounds = array<i64: 1, 128>}, {pipeline_mode = #tpu.pipeline_mode<synchronous>, transform_indices = @transform_7, window_bounds = array<i64: 128, 8>}, {pipeline_mode = #tpu.pipeline_mode<synchronous>, transform_indices = @transform_8, window_bounds = array<i64: 1, 8>}, {transform_indices = @transform_9, window_bounds = array<i64: 8, 8>}]} {
    %c0 = arith.constant 0 : index
    %c0_0 = arith.constant 0 : index
    %0 = vector.load %arg1[%c0, %c0_0] : memref<8x32xf32, #tpu.memory_space<vmem>>, vector<8x32xf32>
    %1 = arith.truncf %0 : vector<8x32xf32> to vector<8x32xbf16>
    %c0_1 = arith.constant 0 : index
    %c0_2 = arith.constant 0 : index
    %2 = vector.load %arg2[%c0_1, %c0_2] : memref<32x128xbf16, #tpu.memory_space<vmem>>, vector<32x128xbf16>
    %cst = arith.constant dense<0.000000e+00> : vector<8x128xf32>
    %3 = tpu.matmul %1, %2, %cst {dimension_numbers = #tpu.dot_dimension_numbers<[1], [0], [0], [1], [0, 0, 1, 1], [], []>} : vector<8x32xbf16>, vector<32x128xbf16>, vector<8x128xf32> -> vector<8x128xf32>
    %c0_3 = arith.constant 0 : index
    %c0_4 = arith.constant 0 : index
    %4 = vector.load %arg3[%c0_3, %c0_4] : memref<1x128xf32, #tpu.memory_space<vmem>>, vector<1x128xf32>
    %5 = vector.broadcast %4 : vector<1x128xf32> to vector<8x128xf32>
    %6 = arith.addf %3, %5 : vector<8x128xf32>
    %cst_5 = arith.constant 0.000000e+00 : f32
    %7 = vector.broadcast %cst_5 : f32 to vector<8x128xf32>
    %8 = arith.maximumf %6, %7 : vector<8x128xf32>
    %9 = arith.truncf %8 : vector<8x128xf32> to vector<8x128xbf16>
    %c0_6 = arith.constant 0 : index
    %c0_7 = arith.constant 0 : index
    %10 = vector.load %arg4[%c0_6, %c0_7] : memref<128x256xbf16, #tpu.memory_space<vmem>>, vector<128x256xbf16>
    %cst_8 = arith.constant dense<0.000000e+00> : vector<8x256xf32>
    %11 = tpu.matmul %9, %10, %cst_8 {dimension_numbers = #tpu.dot_dimension_numbers<[1], [0], [0], [1], [0, 0, 1, 1], [], []>} : vector<8x128xbf16>, vector<128x256xbf16>, vector<8x256xf32> -> vector<8x256xf32>
    %c0_9 = arith.constant 0 : index
    %c0_10 = arith.constant 0 : index
    %12 = vector.load %arg5[%c0_9, %c0_10] : memref<1x256xf32, #tpu.memory_space<vmem>>, vector<1x256xf32>
    %13 = vector.broadcast %12 : vector<1x256xf32> to vector<8x256xf32>
    %14 = arith.addf %11, %13 : vector<8x256xf32>
    %cst_11 = arith.constant 0.000000e+00 : f32
    %15 = vector.broadcast %cst_11 : f32 to vector<8x256xf32>
    %16 = arith.maximumf %14, %15 : vector<8x256xf32>
    %17 = arith.truncf %16 : vector<8x256xf32> to vector<8x256xbf16>
    %c0_12 = arith.constant 0 : index
    %c0_13 = arith.constant 0 : index
    %18 = vector.load %arg6[%c0_12, %c0_13] : memref<256x128xbf16, #tpu.memory_space<vmem>>, vector<256x128xbf16>
    %cst_14 = arith.constant dense<0.000000e+00> : vector<8x128xf32>
    %19 = tpu.matmul %17, %18, %cst_14 {dimension_numbers = #tpu.dot_dimension_numbers<[1], [0], [0], [1], [0, 0, 1, 1], [], []>} : vector<8x256xbf16>, vector<256x128xbf16>, vector<8x128xf32> -> vector<8x128xf32>
    %c0_15 = arith.constant 0 : index
    %c0_16 = arith.constant 0 : index
    %20 = vector.load %arg7[%c0_15, %c0_16] : memref<1x128xf32, #tpu.memory_space<vmem>>, vector<1x128xf32>
    %21 = vector.broadcast %20 : vector<1x128xf32> to vector<8x128xf32>
    %22 = arith.addf %19, %21 : vector<8x128xf32>
    %23 = math.tanh %22 : vector<8x128xf32>
    %24 = arith.truncf %23 : vector<8x128xf32> to vector<8x128xbf16>
    %c0_17 = arith.constant 0 : index
    %c0_18 = arith.constant 0 : index
    %25 = vector.load %arg8[%c0_17, %c0_18] : memref<128x8xbf16, #tpu.memory_space<vmem>>, vector<128x8xbf16>
    %cst_19 = arith.constant dense<0.000000e+00> : vector<8x8xf32>
    %26 = tpu.matmul %24, %25, %cst_19 {dimension_numbers = #tpu.dot_dimension_numbers<[1], [0], [0], [1], [0, 0, 1, 1], [], []>} : vector<8x128xbf16>, vector<128x8xbf16>, vector<8x8xf32> -> vector<8x8xf32>
    %c0_20 = arith.constant 0 : index
    %c0_21 = arith.constant 0 : index
    %27 = vector.load %arg9[%c0_20, %c0_21] : memref<1x8xf32, #tpu.memory_space<vmem>>, vector<1x8xf32>
    %28 = vector.broadcast %27 : vector<1x8xf32> to vector<8x8xf32>
    %29 = arith.addf %26, %28 : vector<8x8xf32>
    %c0_22 = arith.constant 0 : index
    %c0_23 = arith.constant 0 : index
    %30 = vector.load %arg10[%c0_22, %c0_23] : memref<8x8xf32, #tpu.memory_space<vmem>>, vector<8x8xf32>
    tpu.vector_store %arg10[%c0_22, %c0_23], %29 {strides = array<i32>} : memref<8x8xf32, #tpu.memory_space<vmem>>, vector<8x8xf32>,
    return
  }
  func.func @transform_0(%arg0: i32) -> (i32, i32) {
    %c0_i32 = arith.constant 0 : i32
    %c0_i32_0 = arith.constant 0 : i32
    return %arg0, %c0_i32 : i32, i32
  }
  func.func @transform_1(%arg0: i32) -> (i32, i32) {
    %c0_i32 = arith.constant 0 : i32
    %c0_i32_0 = arith.constant 0 : i32
    %c0_i32_1 = arith.constant 0 : i32
    return %c0_i32, %c0_i32_0 : i32, i32
  }
  func.func @transform_2(%arg0: i32) -> (i32, i32) {
    %c0_i32 = arith.constant 0 : i32
    %c0_i32_0 = arith.constant 0 : i32
    %c0_i32_1 = arith.constant 0 : i32
    return %c0_i32, %c0_i32_0 : i32, i32
  }
  func.func @transform_3(%arg0: i32) -> (i32, i32) {
    %c0_i32 = arith.constant 0 : i32
    %c0_i32_0 = arith.constant 0 : i32
    %c0_i32_1 = arith.constant 0 : i32
    return %c0_i32, %c0_i32_0 : i32, i32
  }
  func.func @transform_4(%arg0: i32) -> (i32, i32) {
    %c0_i32 = arith.constant 0 : i32
    %c0_i32_0 = arith.constant 0 : i32
    %c0_i32_1 = arith.constant 0 : i32
    return %c0_i32, %c0_i32_0 : i32, i32
  }
  func.func @transform_5(%arg0: i32) -> (i32, i32) {
    %c0_i32 = arith.constant 0 : i32
    %c0_i32_0 = arith.constant 0 : i32
    %c0_i32_1 = arith.constant 0 : i32
    return %c0_i32, %c0_i32_0 : i32, i32
  }
  func.func @transform_6(%arg0: i32) -> (i32, i32) {
    %c0_i32 = arith.constant 0 : i32
    %c0_i32_0 = arith.constant 0 : i32
    %c0_i32_1 = arith.constant 0 : i32
    return %c0_i32, %c0_i32_0 : i32, i32
  }
  func.func @transform_7(%arg0: i32) -> (i32, i32) {
    %c0_i32 = arith.constant 0 : i32
    %c0_i32_0 = arith.constant 0 : i32
    %c0_i32_1 = arith.constant 0 : i32
    return %c0_i32, %c0_i32_0 : i32, i32
  }
  func.func @transform_8(%arg0: i32) -> (i32, i32) {
    %c0_i32 = arith.constant 0 : i32
    %c0_i32_0 = arith.constant 0 : i32
    %c0_i32_1 = arith.constant 0 : i32
    return %c0_i32, %c0_i32_0 : i32, i32
  }
  func.func @transform_9(%arg0: i32) -> (i32, i32) {
    %c0_i32 = arith.constant 0 : i32
    %c0_i32_0 = arith.constant 0 : i32
    return %arg0, %c0_i32 : i32, i32
  }
}

</mosaic_0001>

<bundles_post_ra>
// kernel: model_dynamics_forward.1
= control target key start
LH: loop header
LB: loop body
LE: loop exit
PB: predicated region body
PF: predicated region fallthrough
CT: control target
= control target key end

     0   :  { %14 = vsyncpa [#allocation3], 0  ;;  %s956_s0 = inlined_call_operand.vmem [shape: f32[8,32], index: 0, kind: input, shape index: {}]   ;;  %s957_s1 = inlined_call_operand.vmem [shape: bf16[32,128], index: 1, kind: input, shape index: {}]   ;;  %s958_s2 = inlined_call_operand.vmem [shape: f32[1,128], index: 2, kind: input, shape index: {}]   ;;  %s959_s3 = inlined_call_operand.hbm [shape: bf16[128,256], index: 3, kind: input, shape index: {}]   ;;  %s960_s4 = inlined_call_operand.vmem [shape: f32[1,256], index: 4, kind: input, shape index: {}]   ;;  %s961_s5 = inlined_call_operand.hbm [shape: bf16[256,128], index: 5, kind: input, shape index: {}]   ;;  %s962_s6 = inlined_call_operand.vmem [shape: f32[1,128], index: 6, kind: input, shape index: {}]   ;;  %s963_s7 = inlined_call_operand.vmem [shape: bf16[128,8], index: 7, kind: input, shape index: {}]   ;;  %s964_s8 = inlined_call_operand.vmem [shape: f32[1,8], index: 8, kind: input, shape index: {}]   ;;  %s965_s9 = inlined_call_operand.hbm [shape: f32[8,8], index: 9, kind: output, shape index: {}]  }
   0x1   :  { %15 = vsyncpa [#allocation6], 0 }
   0x2   :  { %16 = vsyncpa [#allocation4], 0  ;;  %s828_s30 = smov [#allocation2]  }
   0x3   :  { %s28_s10 = sshll.u32 %s828_s30, 4  ;;  %s29_s10 = int_to_ptr.vmem [resolvable:$true] %s28_s10 }
   0x4   :  { %s770_s11 = scalar_lea.vmem %s29_s10, 2048  ;;  %p775_p1 = scmp.lt.s32.totalorder %s29_s10, %s29_s10 }
   0x5   :  { %p771_p0 = scmp.ne.s32.totalorder %s29_s10, %s770_s11  ;;  %p776_p2 = scmp.lt.s32.totalorder %s770_s11, %s770_s11 }
   0x7   :  { %p777_p3 = por %p776_p2, %p775_p1 }
   0x9   :  { %p778_p4 = pnand %p777_p3, %p771_p0 }
   0xb   :  { %781 = shalt.err (!%p778_p4)
}
   0xc   :  { %s829_s12 = smov 128   ;;  %s830_s13 = smov 8  }
   0xd   :  { %34 = dma.hbm_to_vmem [thread:$0]  %s959_s3, 2048, %s29_s10, [#allocation3], %s829_s12, %s829_s12, %s830_s13  }
   0xe   :  { %s831_s16 = smov [#allocation5]  }
   0xf   :  { %s42_s17 = sshll.u32 %s831_s16, 4  ;;  %s43_s17 = int_to_ptr.vmem [resolvable:$true] %s42_s17 }
  0x10   :  { %s790_s18 = scalar_lea.vmem %s43_s17, 2048  ;;  %p795_p6 = scmp.lt.s32.totalorder %s43_s17, %s43_s17 }
  0x11   :  { %p791_p5 = scmp.ne.s32.totalorder %s43_s17, %s790_s18  ;;  %p796_p7 = scmp.lt.s32.totalorder %s790_s18, %s790_s18 }
  0x13   :  { %p797_p8 = por %p796_p7, %p795_p6 }
  0x15   :  { %p798_p9 = pnand %p797_p8, %p791_p5 }
  0x17   :  { %801 = shalt.err (!%p798_p9)
}
  0x18   :  { %s832_s19 = smov 64   ;;  %s833_s20 = smov 4  }
  0x19   :  { %48 = dma.hbm_to_vmem [thread:$0]  %s961_s5, 2048, %s43_s17, [#allocation6], %s832_s19, %s832_s19, %s833_s20  }
  0x1a   :  { %822 = dma.done.wait [#allocation3], 2048  }
  0x1b   :  { %823 = vsyncadd [#allocation3], 4294965248 }
  0x1c   :  { %824 = dma.done.wait [#allocation6], 2048  }
  0x1d   :  { %825 = vsyncadd [#allocation6], 4294965248  ;;  %v834_v0 = vmov 0.0   ;;  %vm835_vm0 = vmmov 0   ;;  %v710_v1 = vld [vmem:[%s957_s1 + $0x8] sm:$0xff]   ;;  %v711_v2 = vld [vmem:[%s957_s1] sm:$0xff]   ;;  %v151_v48 = vlaneseq }
  0x1e   :  { %672 = vmatprep.subr.bf16.mxu0 %v834_v0  ;;  %676 = vmatprep.mubr.msk.bf16.mxu0 %vm835_vm0, %v834_v0  ;;  %v62_v3 = vld [vmem:[%s956_s0] sm:$0xff]  ;;  %v712_v4 = vld [vmem:[#allocation2 + $0x74] ss:$8 sps:$4 sm:$0xff]   ;;  %v714_v5 = vld [vmem:[#allocation2 + $0x70] ss:$8 sps:$4 sm:$0xff]   ;;  %vm87_vm1 = vcmask 261120  }
  0x1f   :  { %673 = vmatpush3.bf16.msra.mxu0 %v710_v1  ;;  %v715_v6 = vld [vmem:[#allocation2 + $0x64] ss:$8 sps:$4 sm:$0xff]   ;;  %v63_v7 = vpack.c.bf16 %v62_v3, %v62_v3  ;;  %241 = vmatprep.subr.bf16.mxu1 %v712_v4  ;;  %v717_v8 = vld [vmem:[#allocation2 + $0x60] ss:$8 sps:$4 sm:$0xff]   ;;  %v718_v9 = vld [vmem:[#allocation2 + $0x54] ss:$8 sps:$4 sm:$0xff]  }
  0x20   :  { %674 = vmatprep.subr.bf16.mxu0 %v834_v0  ;;  %242 = vmatpush1.bf16.msra.mxu1 %v714_v5  ;;  %v720_v10 = vld [vmem:[#allocation2 + $0x50] ss:$8 sps:$4 sm:$0xff]   ;;  %v721_v11 = vld [vmem:[#allocation2 + $0x44] ss:$8 sps:$4 sm:$0xff]   ;;  %v723_v12 = vld [vmem:[#allocation2 + $0x40] ss:$8 sps:$4 sm:$0xff]  }
  0x21   :  { %243 = vmatprep.subr.bf16.mxu1 %v715_v6  ;;  %v724_v13 = vld [vmem:[#allocation2 + $0x34] ss:$8 sps:$4 sm:$0xff]   ;;  %v726_v14 = vld [vmem:[#allocation2 + $0x30] ss:$8 sps:$4 sm:$0xff]   ;;  %v727_v15 = vld [vmem:[#allocation2 + $0x24] ss:$8 sps:$4 sm:$0xff]  }
  0x22   :  { %v729_v16 = vld [vmem:[#allocation2 + $0x20] ss:$8 sps:$4 sm:$0xff]   ;;  %v730_v17 = vld [vmem:[#allocation2 + $0x14] ss:$8 sps:$4 sm:$0xff]   ;;  %v732_v18 = vld [vmem:[#allocation2 + $0x10] ss:$8 sps:$4 sm:$0xff]  }
  0x23   :  { %675 = vmatpush3.bf16.msra.mxu0 %v711_v2  ;;  %v733_v19 = vld [vmem:[#allocation2 + $0x4] ss:$8 sps:$4 sm:$0xff]   ;;  %v735_v20 = vld [vmem:[#allocation2] ss:$8 sps:$4 sm:$0xff]   ;;  %v836_v21 = vmov 0   ;;  %v736_v22 = vld [vmem:[#allocation5 + $0x78] sm:$0xff]  }
  0x24   :  { %244 = vmatpush1.bf16.msra.mxu1 %v717_v8  ;;  %273 = vmatprep.mubr.bf16.mxu1 %v836_v21  ;;  %v737_v23 = vld [vmem:[#allocation5 + $0x38] sm:$0xff]   ;;  %v738_v24 = vld [vmem:[#allocation5 + $0x70] sm:$0xff]   ;;  %v740_v26 = vld [vmem:[#allocation5 + $0x68] sm:$0xff]   ;;  %v152_v49 = vshrl.u32 %v151_v48, 7  ;;  %vm574_vm2 = vcmask 64512  }
  0x25   :  { %245 = vmatprep.subr.bf16.mxu1 %v718_v9  ;;  %641 = vmatprep.subr.bf16.mxu0 %v736_v22  ;;  %v739_v25 = vld [vmem:[#allocation5 + $0x30] sm:$0xff]   ;;  %v741_v27 = vld [vmem:[#allocation5 + $0x28] sm:$0xff]   ;;  %v742_v28 = vld [vmem:[#allocation5 + $0x60] sm:$0xff]  }
  0x26   :  { %677 = vmatmul.mubr.msk.bf16.vlgmr.msra.gmra.mxu0 %vm87_vm1, %v63_v7  ;;  %v743_v29 = vld [vmem:[#allocation5 + $0x20] sm:$0xff]   ;;  %v744_v30 = vld [vmem:[#allocation5 + $0x58] sm:$0xff]   ;;  %v746_v32 = vld [vmem:[#allocation5 + $0x50] sm:$0xff]   ;;  %v153_v50 = vsub.s32 0, %v152_v49  ;;  %v157_v52 = vsub.s32 1, %v152_v49 }
  0x27   :  { %642 = vmatpush3.bf16.msra.mxu0 %v737_v23  ;;  %v745_v31 = vld [vmem:[#allocation5 + $0x18] sm:$0xff]   ;;  %v747_v33 = vld [vmem:[#allocation5 + $0x10] sm:$0xff]   ;;  %v592_v34 = vld [vmem:[%s958_s2] ss:$0 sm:$0xff] }
  0x28   :  { %246 = vmatpush1.bf16.msra.mxu1 %v720_v10  ;;  %643 = vmatprep.subr.bf16.mxu0 %v738_v24  ;;  %v748_v42 = vld [vmem:[#allocation5 + $0x48] sm:$0xff]   ;;  %v750_v44 = vld [vmem:[#allocation5 + $0x40] sm:$0xff]   ;;  %v752_v46 = vld [vmem:[%s963_s7 + $0x38] sm:$0xff]  }
  0x29   :  { %247 = vmatprep.subr.bf16.mxu1 %v721_v11  ;;  %v749_v43 = vld [vmem:[#allocation5 + $0x8] sm:$0xff]   ;;  %v751_v45 = vld [vmem:[#allocation5] sm:$0xff]   ;;  %v753_v47 = vld [vmem:[%s963_s7 + $0x30] sm:$0xff]  }
  0x2a   :  { %v149_v51 = vld [vmem:[%s960_s4] sm:$0x3]  ;;  %v754_v2 = vld [vmem:[%s963_s7 + $0x28] sm:$0xff]   ;;  %v756_v4 = vld [vmem:[%s963_s7 + $0x18] sm:$0xff]  }
  0x2b   :  { %644 = vmatpush3.bf16.msra.mxu0 %v739_v25  ;;  %v154_v53 = vrot.slane %v149_v51, %v153_v50  ;;  %v158_v54 = vrot.slane %v149_v51, %v157_v52  ;;  %v755_v3 = vld [vmem:[%s963_s7 + $0x20] sm:$0xff]   ;;  %v757_v5 = vld [vmem:[%s963_s7 + $0x10] sm:$0xff]   ;;  %v758_v6 = vld [vmem:[%s963_s7 + $0x8] sm:$0xff]  }
  0x2c   :  { %248 = vmatpush1.bf16.msra.mxu1 %v723_v12  ;;  %645 = vmatprep.subr.bf16.mxu0 %v740_v26  ;;  %v759_v7 = vld [vmem:[%s963_s7] sm:$0xff]   ;;  %s837_s7 = smov [#allocation7]  }
  0x2d   :  { %249 = vmatprep.subr.bf16.mxu1 %v724_v13  ;;  %v612_v9 = vld [vmem:[%s962_s6] ss:$0 sm:$0xff]  ;;  %s582_s25 = sshll.u32 %s837_s7, 4  ;;  %s583_s25 = int_to_ptr.vmem [resolvable:$true] %s582_s25 }
  0x2e   :  { %s802_s6 = scalar_lea.vmem %s583_s25, 128  ;;  %p807_p11 = scmp.lt.s32.totalorder %s583_s25, %s583_s25 }
  0x2f   :  { %646 = vmatpush3.bf16.msra.mxu0 %v741_v27  ;;  %p803_p10 = scmp.ne.s32.totalorder %s583_s25, %s802_s6  ;;  %p808_p12 = scmp.lt.s32.totalorder %s802_s6, %s802_s6 }
  0x30   :  { %250 = vmatpush1.bf16.msra.mxu1 %v726_v14  ;;  %647 = vmatprep.subr.bf16.mxu0 %v742_v28 }
  0x31   :  { %251 = vmatprep.subr.bf16.mxu1 %v727_v15  ;;  %p809_p13 = por %p808_p12, %p807_p11 }
  0x33   :  { %648 = vmatpush3.bf16.msra.mxu0 %v743_v29  ;;  %p810_p0 = pnand %p809_p13, %p803_p10 }
  0x34   :  { %252 = vmatpush1.bf16.msra.mxu1 %v729_v16  ;;  %649 = vmatprep.subr.bf16.mxu0 %v744_v30 }
  0x35   :  { %253 = vmatprep.subr.bf16.mxu1 %v730_v17 }
  0x37   :  { %650 = vmatpush3.bf16.msra.mxu0 %v745_v31 }
  0x38   :  { %254 = vmatpush1.bf16.msra.mxu1 %v732_v18  ;;  %651 = vmatprep.subr.bf16.mxu0 %v746_v32 }
  0x39   :  { %255 = vmatprep.subr.bf16.mxu1 %v733_v19 }
  0x3b   :  { %652 = vmatpush3.bf16.msra.mxu0 %v747_v33 }
  0x3c   :  { %256 = vmatpush1.bf16.msra.mxu1 %v735_v20  ;;  %653 = vmatprep.subr.bf16.mxu0 %v748_v42 }
  0x3d   :  { %680 = vmatprep.subr.bf16.mxu1 %v834_v0 }
  0x3f   :  { %654 = vmatpush3.bf16.msra.mxu0 %v749_v43 }
  0x40   :  { %655 = vmatprep.subr.bf16.mxu0 %v750_v44 }
  0x43   :  { %656 = vmatpush3.bf16.msra.mxu0 %v751_v45 }
  0xe6   :  { %v125_v35 = vpop.f32.mrf.mxu0 }
  0xe7   :  { %v126_v36 = vadd.f32 %v592_v34, %v125_v35 }
  0xe8   :  { %v678_v37 = vpop.f32.mrf.mxu0 }
  0xe9   :  { %v131_v38 = vmax.f32 %v126_v36, 0.0 }
  0xea   :  { %v128_v39 = vpop.f32.mrf.mxu0 }
  0xeb   :  { %v132_v40 = vpack.c.bf16 %v131_v38, %v131_v38 }
  0xec   :  { %v679_v41 = vpop.f32.mrf.mxu0 }
  0xed   :  { %274 = vmatmul.mubr.bf16.vlgmr.msra.gmra.mxu1 %v132_v40 }
  0xee   :  { %696 = vmatprep.mubr.msk.bf16.mxu1 %vm835_vm0, %v834_v0  ;;  %681 = vmatpush3.bf16.msra.mxu1 %v752_v46 }
  0xef   :  { %682 = vmatprep.subr.bf16.mxu1 %v834_v0 }
  0xf2   :  { %683 = vmatpush3.bf16.msra.mxu1 %v753_v47 }
  0xf3   :  { %684 = vmatprep.subr.bf16.mxu1 %v834_v0 }
  0xf6   :  { %685 = vmatpush3.bf16.msra.mxu1 %v754_v2 }
  0xf7   :  { %686 = vmatprep.subr.bf16.mxu1 %v834_v0 }
  0xfa   :  { %687 = vmatpush3.bf16.msra.mxu1 %v755_v3 }
  0xfb   :  { %688 = vmatprep.subr.bf16.mxu1 %v834_v0 }
  0xfe   :  { %689 = vmatpush3.bf16.msra.mxu1 %v756_v4 }
  0xff   :  { %690 = vmatprep.subr.bf16.mxu1 %v834_v0 }
 0x102   :  { %691 = vmatpush3.bf16.msra.mxu1 %v757_v5 }
 0x103   :  { %692 = vmatprep.subr.bf16.mxu1 %v834_v0 }
 0x106   :  { %693 = vmatpush3.bf16.msra.mxu1 %v758_v6 }
 0x107   :  { %694 = vmatprep.subr.bf16.mxu1 %v834_v0  ;;  %v629_v0 = vld [vmem:[%s964_s8] ss:$0 sm:$0xff] }
 0x10a   :  { %695 = vmatpush3.bf16.msra.mxu1 %v759_v7 }
 0x1ad   :  { %v275_v55 = vpop.f32.mrf.mxu1 }
 0x1ae   :  { %v276_v56 = vadd.f32 %v275_v55, %v154_v53 }
 0x1af   :  { %v277_v57 = vpop.f32.mrf.mxu1 }
 0x1b0   :  { %v278_v58 = vadd.f32 %v277_v57, %v158_v54  ;;  %v282_v59 = vmax.f32 %v276_v56, 0.0 }
 0x1b1   :  { %v279_v60 = vpop.f32.mrf.mxu1 }
 0x1b2   :  { %v283_v61 = vmax.f32 %v278_v58, 0.0  ;;  %v284_v1 = vpack.c.bf16 %v282_v59, %v282_v59 }
 0x1b3   :  { %v280_v62 = vpop.f32.mrf.mxu1 }
 0x1b4   :  { %v285_v63 = vpack.c.bf16 %v283_v61, %v283_v61 }
 0x1b6   :  { %453 = vmatprep.mubr.bf16.mxu0 %v285_v63 }
 0x1b7   :  { %454 = vmatmul.mubr.bf16.vlgmr.msra.gmra.mxu0 %v284_v1 }
 0x277   :  { %v657_v8 = vpop.f32.mrf.mxu0 }
 0x279   :  { %v658_v10 = vpop.f32.mrf.mxu0 }
 0x27a   :  { %v659_v11 = vadd.f32 %v658_v10, %v657_v8 }
 0x27b   :  { %v660_v12 = vpop.f32.mrf.mxu0 }
 0x27c   :  { %v456_v13 = vadd.f32 %v659_v11, %v612_v9 }
 0x27d   :  { %v661_v14 = vpop.f32.mrf.mxu0 }
 0x27e   :  { %760 = vtanh.f32 %v456_v13 }
 0x28b   :  { %v761_v15 = vpop.eup %760 }
 0x28c   :  { %v462_v16 = vpack.c.bf16 %v761_v15, %v761_v15 }
 0x28e   :  { %697 = vmatmul.mubr.bf16.vlgmr.msra.gmra.mxu1 %v462_v16 }
 0x34e   :  { %v568_v17 = vpop.f32.mrf.mxu1 }
 0x34f   :  { %v569_v18 = vadd.f32 %v629_v0, %v568_v17 }
 0x350   :  { %v698_v19 = vpop.f32.mrf.mxu1 }
 0x351   :  { %575 = vst.msk [vmem:[#allocation7] sm:$0xff] %vm574_vm2, %v569_v18 }
 0x352   :  { %v571_v20 = vpop.f32.mrf.mxu1 }
 0x353   :  { %813 = shalt.err (!%p810_p0)
}
 0x354   :  { %585 = dma.vmem_to_hbm [thread:$0]  %s583_s25, 128, %s965_s9, [#allocation4]   ;;  %v699_v21 = vpop.f32.mrf.mxu1 }
 0x355   :  { %826 = dma.done.wait [#allocation4], 128  }
 0x356   :  { %827 = vsyncadd [#allocation4], 4294967168 }
 0x357   :  { %589 = vsyncpa [#allocation3], 1 }
 0x358   :  { %590 = vsyncpa [#allocation6], 1 }
 0x359   :  { %591 = vsyncpa [#allocation4], 1 }

</bundles_post_ra>
